<compile_context>
chip_gen: v7x
topology: tpu7x:2x2x1
jax: 0.10.0
libtpu: 0.0.40
codegen_flags: <defaults>
</compile_context>

<pallas_src>
import functools

import jax
import jax.numpy as jnp
from jax import lax
from jax.experimental import pallas as pl
from jax.experimental.pallas import tpu as pltpu

_LANE = 128


def _mse_kernel(x_ref, y_ref, out_ref, acc_ref, *, tile_rows, tiles_per_split,
                num_tiles, last_tile_rows, num_splits):
    c = pl.program_id(0)          # split axis ("parallel")
    i = pl.program_id(1)          # reduction axis ("arbitrary")
    t = c * tiles_per_split + i   # global tile index

    @pl.when(i == 0)
    def _():
        acc_ref[...] = jnp.zeros_like(acc_ref)

    vreg_aligned = (tile_rows % 8) == 0

    def accumulate(sq):
        if vreg_aligned:
            # Pure VPU vreg adds; no per-step cross-sublane XLU reduce.
            acc_ref[...] += jnp.sum(
                sq.reshape(tile_rows // 8, 8, _LANE), axis=0)
        else:
            acc_ref[...] += jnp.sum(sq, axis=0, keepdims=True)

    diff = x_ref[...].astype(jnp.float32) - y_ref[...].astype(jnp.float32)
    sq = diff * diff

    ragged_last = last_tile_rows != tile_rows          # static Python bool
    has_ghost = num_splits * tiles_per_split != num_tiles

    if ragged_last:
        # Steady state: unmasked. Only the final (partial) tile pays for the
        # iota/compare/select, and ghost steps (t >= num_tiles) do nothing.
        @pl.when(t < num_tiles - 1)
        def _():
            accumulate(sq)

        @pl.when(t == num_tiles - 1)
        def _():
            r = lax.broadcasted_iota(jnp.int32, sq.shape, 0)
            # Keep select semantics: garbage rows may hold NaN/Inf.
            accumulate(jnp.where(r < last_tile_rows, sq, 0.0))
    elif has_ghost:
        @pl.when(t < num_tiles)
        def _():
            accumulate(sq)
    else:
        accumulate(sq)

    @pl.when(i == pl.num_programs(1) - 1)
    def _():
        if vreg_aligned:
            out_ref[...] = jnp.sum(acc_ref[...], axis=0, keepdims=True)
        else:
            out_ref[...] = acc_ref[...]


def mse_loss(x, y, *, block_bytes=4 << 20):
    """Pallas equivalent of nn.MSELoss()(x, y) (mean reduction)."""
    assert x.shape == y.shape, "MSELoss requires matching shapes"
    n = int(x.size)
    assert n > 0, "MSELoss on empty input not supported"

    xf = x.reshape(-1)
    yf = y.reshape(-1)

    rows = n // _LANE
    bulk = rows * _LANE

    # Ragged lane tail (<128 elements): tiny wrapper-side reduction, no padded
    # copy of the full inputs.
    tail_sum = jnp.float32(0.0)
    if bulk != n:
        td = xf[bulk:].astype(jnp.float32) - yf[bulk:].astype(jnp.float32)
        tail_sum = jnp.sum(td * td)

    if rows == 0:
        return (tail_sum / jnp.float32(n)).astype(jnp.float32)

    x2 = xf[:bulk].reshape(rows, _LANE)
    y2 = yf[:bulk].reshape(rows, _LANE)

    # Tile sizing: ~block_bytes per input block (8192 rows f32 / 16384 bf16),
    # multiple of 8 rows; single full-extent tile when everything fits.
    itemsize = max(x2.dtype.itemsize, y2.dtype.itemsize)
    max_tile_rows = max(8, (block_bytes // (_LANE * itemsize)) // 8 * 8)
    if rows <= max_tile_rows:
        tile_rows = rows
        num_tiles = 1
    else:
        tile_rows = max_tile_rows
        num_tiles = pl.cdiv(rows, tile_rows)
    last_tile_rows = rows - (num_tiles - 1) * tile_rows

    # 2-way split of the tile range (leading "parallel" axis). Odd tile counts
    # are handled by clamping the index_map and skipping the ghost step.
    num_splits = 2 if num_tiles >= 2 else 1
    tiles_per_split = pl.cdiv(num_tiles, num_splits)
    has_ghost = num_splits * tiles_per_split != num_tiles

    if has_ghost:
        def in_map(c, i):
            return (jnp.minimum(c * tiles_per_split + i, num_tiles - 1), 0)
    else:
        def in_map(c, i):
            return (c * tiles_per_split + i, 0)

    acc_shape = (8, _LANE) if tile_rows % 8 == 0 else (1, _LANE)

    kernel = functools.partial(
        _mse_kernel,
        tile_rows=tile_rows,
        tiles_per_split=tiles_per_split,
        num_tiles=num_tiles,
        last_tile_rows=last_tile_rows,
        num_splits=num_splits,
    )

    cost = pl.CostEstimate(
        flops=3 * bulk,
        transcendentals=0,
        bytes_accessed=bulk * (x2.dtype.itemsize + y2.dtype.itemsize)
        + num_splits * _LANE * 4,
    )

    partials = pl.pallas_call(
        kernel,
        out_shape=jax.ShapeDtypeStruct((num_splits, _LANE), jnp.float32),
        grid_spec=pltpu.PrefetchScalarGridSpec(
            num_scalar_prefetch=0,
            grid=(num_splits, tiles_per_split),
            in_specs=[
                pl.BlockSpec((tile_rows, _LANE), in_map),
                pl.BlockSpec((tile_rows, _LANE), in_map),
            ],
            out_specs=pl.BlockSpec((1, _LANE), lambda c, i: (c, 0)),
            scratch_shapes=[pltpu.VMEM(acc_shape, jnp.float32)],
        ),
        compiler_params=pltpu.CompilerParams(
            dimension_semantics=("parallel", "arbitrary"),
            vmem_limit_bytes=32 << 20,
        ),
        cost_estimate=cost,
    )(x2, y2)

    # Final 128-lane reduce + tail + mean over the ORIGINAL element count.
    total = jnp.sum(partials) + tail_sum
    return (total / jnp.float32(n)).astype(jnp.float32)


def mse_loss_ref(x, y):
    d = x.astype(jnp.float32) - y.astype(jnp.float32)
    return jnp.mean(d * d)


if __name__ == "__main__":
    key = jax.random.PRNGKey(0)
    kx, ky = jax.random.split(key)
    # Small NCHW shapes consistent with a typical conv-net output / target.
    x = jax.random.normal(kx, (2, 4, 16, 16), dtype=jnp.float32)
    y = jax.random.normal(ky, (2, 4, 16, 16), dtype=jnp.float32)

    loss = mse_loss(x, y)
    jax.block_until_ready(loss)

    ref = mse_loss_ref(x, y)
    assert jnp.allclose(loss, ref, rtol=1e-5, atol=1e-6), (loss, ref)
    print("KERNEL_OK")
</pallas_src>

<mosaic_0001>
module attributes {stable_mosaic.version = 11 : i64} {
  func.func @_mse_kernel(%arg0: i32, %arg1: i32, %arg2: memref<16x128xf32, #tpu.memory_space<vmem>>, %arg3: memref<16x128xf32, #tpu.memory_space<vmem>>, %arg4: memref<1x128xf32, #tpu.memory_space<vmem>>, %arg5: memref<8x128xf32, #tpu.memory_space<vmem>>) attributes {dimension_semantics = [#tpu.dimension_semantics<parallel>, #tpu.dimension_semantics<arbitrary>], iteration_bounds = array<i64: 1, 1>, scalar_prefetch = 0 : i64, scratch_operands = 1 : i64, tpu.core_type = #tpu.core_type<tc>, window_params = [{transform_indices = @transform_0, window_bounds = array<i64: 16, 128>}, {transform_indices = @transform_1, window_bounds = array<i64: 16, 128>}, {transform_indices = @transform_2, window_bounds = array<i64: 1, 128>}]} {
    %c0_i32 = arith.constant 0 : i32
    %0 = arith.cmpi eq, %arg1, %c0_i32 : i32
    %1 = arith.extui %0 : i1 to i32
    %c0_i32_0 = arith.constant 0 : i32
    %2 = arith.cmpi ne, %1, %c0_i32_0 : i32
    scf.if %2 {
      %cst_10 = arith.constant 0.000000e+00 : f32
      %15 = vector.broadcast %cst_10 : f32 to vector<8x128xf32>
      %c0_11 = arith.constant 0 : index
      %c0_12 = arith.constant 0 : index
      %16 = vector.load %arg5[%c0_11, %c0_12] : memref<8x128xf32, #tpu.memory_space<vmem>>, vector<8x128xf32>
      tpu.vector_store %arg5[%c0_11, %c0_12], %15 {strides = array<i32>} : memref<8x128xf32, #tpu.memory_space<vmem>>, vector<8x128xf32>,
    } else {
    }
    %c0 = arith.constant 0 : index
    %c0_1 = arith.constant 0 : index
    %3 = vector.load %arg2[%c0, %c0_1] : memref<16x128xf32, #tpu.memory_space<vmem>>, vector<16x128xf32>
    %c0_2 = arith.constant 0 : index
    %c0_3 = arith.constant 0 : index
    %4 = vector.load %arg3[%c0_2, %c0_3] : memref<16x128xf32, #tpu.memory_space<vmem>>, vector<16x128xf32>
    %5 = arith.subf %3, %4 : vector<16x128xf32>
    %6 = arith.mulf %5, %5 : vector<16x128xf32>
    %c0_4 = arith.constant 0 : index
    %c0_5 = arith.constant 0 : index
    %7 = vector.load %arg5[%c0_4, %c0_5] : memref<8x128xf32, #tpu.memory_space<vmem>>, vector<8x128xf32>
    %8 = vector.shape_cast %6 : vector<16x128xf32> to vector<2x8x128xf32>
    %cst = arith.constant dense<0.000000e+00> : vector<8x128xf32>
    %9 = vector.multi_reduction <add>, %8, %cst [0] : vector<2x8x128xf32> to vector<8x128xf32>
    %10 = arith.addf %7, %9 : vector<8x128xf32>
    %c0_6 = arith.constant 0 : index
    %c0_7 = arith.constant 0 : index
    %11 = vector.load %arg5[%c0_6, %c0_7] : memref<8x128xf32, #tpu.memory_space<vmem>>, vector<8x128xf32>
    tpu.vector_store %arg5[%c0_6, %c0_7], %10 {strides = array<i32>} : memref<8x128xf32, #tpu.memory_space<vmem>>, vector<8x128xf32>,
    %c0_i32_8 = arith.constant 0 : i32
    %12 = arith.cmpi eq, %arg1, %c0_i32_8 : i32
    %13 = arith.extui %12 : i1 to i32
    %c0_i32_9 = arith.constant 0 : i32
    %14 = arith.cmpi ne, %13, %c0_i32_9 : i32
    scf.if %14 {
      %c0_10 = arith.constant 0 : index
      %c0_11 = arith.constant 0 : index
      %15 = vector.load %arg5[%c0_10, %c0_11] : memref<8x128xf32, #tpu.memory_space<vmem>>, vector<8x128xf32>
      %cst_12 = arith.constant dense<0.000000e+00> : vector<128xf32>
      %16 = vector.multi_reduction <add>, %15, %cst_12 [0] : vector<8x128xf32> to vector<128xf32>
      %17 = vector.shape_cast %16 : vector<128xf32> to vector<1x128xf32>
      %c0_13 = arith.constant 0 : index
      %c0_14 = arith.constant 0 : index
      %18 = vector.load %arg4[%c0_13, %c0_14] : memref<1x128xf32, #tpu.memory_space<vmem>>, vector<1x128xf32>
      tpu.vector_store %arg4[%c0_13, %c0_14], %17 {strides = array<i32>} : memref<1x128xf32, #tpu.memory_space<vmem>>, vector<1x128xf32>,
    } else {
    }
    return
  }
  func.func @transform_0(%arg0: i32, %arg1: i32) -> (i32, i32) {
    %c1_i32 = arith.constant 1 : i32
    %0 = arith.muli %arg0, %c1_i32 : i32
    %1 = arith.addi %0, %arg1 : i32
    %c0_i32 = arith.constant 0 : i32
    %c0_i32_0 = arith.constant 0 : i32
    return %1, %c0_i32 : i32, i32
  }
  func.func @transform_1(%arg0: i32, %arg1: i32) -> (i32, i32) {
    %c1_i32 = arith.constant 1 : i32
    %0 = arith.muli %arg0, %c1_i32 : i32
    %1 = arith.addi %0, %arg1 : i32
    %c0_i32 = arith.constant 0 : i32
    %c0_i32_0 = arith.constant 0 : i32
    return %1, %c0_i32 : i32, i32
  }
  func.func @transform_2(%arg0: i32, %arg1: i32) -> (i32, i32) {
    %c0_i32 = arith.constant 0 : i32
    %c0_i32_0 = arith.constant 0 : i32
    return %arg0, %c0_i32 : i32, i32
  }
}

</mosaic_0001>

<bundles_post_ra>
// kernel: tpu_custom_call.1
= control target key start
LH: loop header
LB: loop body
LE: loop exit
PB: predicated region body
PF: predicated region fallthrough
CT: control target
= control target key end

     0   :  { %7 = vsyncpa [#allocation4], 0  ;;  %s229_s0 = inlined_call_operand.hbm [shape: f32[16,128], index: 0, kind: input, shape index: {}]   ;;  %s230_s1 = inlined_call_operand.hbm [shape: f32[16,128], index: 1, kind: input, shape index: {}]   ;;  %s231_s2 = inlined_call_operand.hbm [shape: f32[1,128], index: 2, kind: output, shape index: {}]  }
   0x1   :  { %8 = vsyncpa [#allocation7], 0 }
   0x2   :  { %9 = vsyncpa [#allocation5], 0  ;;  %s173_s9 = smov [#allocation3]   ;;  %s101_s13 = scalar_lea.hbm %s229_s0, 256 }
   0x3   :  { %s19_s10 = sshll.u32 %s173_s9, 4  ;;  %p102_p0 = scmp.ne.s32.totalorder %s229_s0, %s101_s13  ;;  %s20_s10 = int_to_ptr.vmem [resolvable:$true] %s19_s10 }
   0x4   :  { %p105_p1 = scmp.lt.u32.totalorder %s101_s13, %s229_s0 }
   0x6   :  { %p107_p2 = pnand %p105_p1, %p102_p0 }
   0x8   :  { %110 = shalt.err (!%p107_p2)
}
   0x9   :  { %s111_s18 = scalar_lea.vmem %s20_s10, 256  ;;  %p116_p4 = scmp.lt.s32.totalorder %s20_s10, %s20_s10 }
   0xa   :  { %p112_p3 = scmp.ne.s32.totalorder %s20_s10, %s111_s18  ;;  %p117_p5 = scmp.lt.s32.totalorder %s111_s18, %s111_s18 }
   0xc   :  { %p118_p6 = por %p117_p5, %p116_p4 }
   0xe   :  { %p119_p7 = pnand %p118_p6, %p112_p3 }
  0x10   :  { %122 = shalt.err (!%p119_p7)
}
  0x11   :  { %s174_s19 = smov 128   ;;  %s175_s20 = smov 8  }
  0x12   :  { %25 = dma.hbm_to_vmem [thread:$0]  %s229_s0, 256, %s20_s10, [#allocation4], %s174_s19, %s174_s19, %s175_s20  }
  0x13   :  { %s176_s23 = smov [#allocation6]   ;;  %s123_s27 = scalar_lea.hbm %s230_s1, 256 }
  0x14   :  { %s35_s24 = sshll.u32 %s176_s23, 4  ;;  %p124_p8 = scmp.ne.s32.totalorder %s230_s1, %s123_s27  ;;  %s36_s24 = int_to_ptr.vmem [resolvable:$true] %s35_s24 }
  0x15   :  { %p127_p9 = scmp.lt.u32.totalorder %s123_s27, %s230_s1 }
  0x17   :  { %p129_p10 = pnand %p127_p9, %p124_p8 }
  0x19   :  { %132 = shalt.err (!%p129_p10)
}
  0x1a   :  { %s133_s4 = scalar_lea.vmem %s36_s24, 256  ;;  %p138_p12 = scmp.lt.s32.totalorder %s36_s24, %s36_s24 }
  0x1b   :  { %p134_p11 = scmp.ne.s32.totalorder %s36_s24, %s133_s4  ;;  %p139_p13 = scmp.lt.s32.totalorder %s133_s4, %s133_s4 }
  0x1d   :  { %p140_p0 = por %p139_p13, %p138_p12 }
  0x1f   :  { %p141_p1 = pnand %p140_p0, %p134_p11 }
  0x21   :  { %144 = shalt.err (!%p141_p1)
}
  0x22   :  { %41 = dma.hbm_to_vmem [thread:$0]  %s230_s1, 256, %s36_s24, [#allocation7], %s174_s19, %s174_s19, %s175_s20  }
  0x23   :  { %167 = dma.done.wait [#allocation4], 256  }
  0x24   :  { %168 = vsyncadd [#allocation4], 4294967040 }
  0x25   :  { %169 = dma.done.wait [#allocation7], 256  }
  0x26   :  { %170 = vsyncadd [#allocation7], 4294967040  ;;  %v57_v0 = vld [vmem:[#allocation3] sm:$0xff]  ;;  %v58_v1 = vld [vmem:[#allocation3 + $0x8] sm:$0xff]  ;;  %s177_s6 = smov [#allocation8]  }
  0x27   :  { %v59_v2 = vld [vmem:[#allocation6] sm:$0xff]  ;;  %v60_v3 = vld [vmem:[#allocation6 + $0x8] sm:$0xff]  ;;  %s86_s7 = sshll.u32 %s177_s6, 4  ;;  %s87_s7 = int_to_ptr.vmem [resolvable:$true] %s86_s7 }
  0x28   :  { %v61_v4 = vsub.f32 %v57_v0, %v59_v2  ;;  %v62_v5 = vsub.f32 %v58_v1, %v60_v3  ;;  %s145_s1 = scalar_lea.vmem %s87_s7, 16  ;;  %s149_s8 = scalar_lea.vmem %s87_s7, 32 }
  0x29   :  { %p146_p2 = scmp.ne.s32.totalorder %s87_s7, %s145_s1  ;;  %p150_p3 = scmp.lt.s32.totalorder %s87_s7, %s87_s7 }
  0x2a   :  { %v63_v6 = vmul.f32 %v61_v4, %v61_v4  ;;  %v64_v7 = vmul.f32 %v62_v5, %v62_v5  ;;  %p151_p4 = scmp.lt.s32.totalorder %s149_s8, %s145_s1 }
  0x2c   :  { %v66_v8 = vadd.f32 %v64_v7, %v63_v6  ;;  %p152_p5 = por %p151_p4, %p150_p3 }
  0x2e   :  { %v73_v9 = vrot.slane %v66_v8, 4  ;;  %p153_p6 = pnand %p152_p5, %p146_p2 }
  0x30   :  { %v74_v10 = vadd.f32 %v73_v9, %v66_v8 }
  0x32   :  { %v75_v11 = vrot.slane %v74_v10, 2 }
  0x34   :  { %v76_v12 = vadd.f32 %v75_v11, %v74_v10 }
  0x36   :  { %v77_v13 = vrot.slane %v76_v12, 1 }
  0x38   :  { %v78_v14 = vadd.f32 %v77_v13, %v76_v12 }
  0x3a   :  { %79 = vst [vmem:[#allocation8] sm:$0x1] %v78_v14 }
  0x3b   :  { %156 = shalt.err (!%p153_p6)
}
  0x3c   :  { %s157_s11 = scalar_lea.hbm %s231_s2, 16 }
  0x3d   :  { %p158_p7 = scmp.ne.s32.totalorder %s231_s2, %s157_s11  ;;  %p161_p8 = scmp.lt.u32.totalorder %s157_s11, %s231_s2 }
  0x3f   :  { %p163_p9 = pnand %p161_p8, %p158_p7 }
  0x41   :  { %166 = shalt.err (!%p163_p9)
}
  0x42   :  { %89 = dma.vmem_to_hbm [thread:$0]  %s87_s7, 16, %s231_s2, [#allocation5]  }
  0x43   :  { %171 = dma.done.wait [#allocation5], 16  }
  0x44   :  { %172 = vsyncadd [#allocation5], 4294967280 }
  0x45   :  { %93 = vsyncpa [#allocation4], 1 }
  0x46   :  { %94 = vsyncpa [#allocation7], 1 }
  0x47   :  { %95 = vsyncpa [#allocation5], 1 }

</bundles_post_ra>
